<compile_context>
chip_gen: v7x
topology: tpu7x:2x2x1
jax: 0.10.0
libtpu: 0.0.40
codegen_flags: <defaults>
</compile_context>

<pallas_src>
import jax
import jax.numpy as jnp
from jax import lax
from jax.experimental import pallas as pl
from jax.experimental.pallas import tpu as pltpu

LANE = 128
MIB = 1 << 20


def _round_up(x, m):
    return pl.cdiv(x, m) * m


def _make_kernel(*, tile_b, tile_n, sub, fold, c_in, n_points, acc_dtype, mask_tail):
    trip = tile_n // sub
    neg = float("-inf")

    def kernel(x_ref, w_ref, b_ref, o_ref, acc_ref):
        # Grid: (batch blocks [parallel], point blocks [arbitrary / reduction, last]).
        k = pl.program_id(1)

        @pl.when(k == 0)
        def _():
            acc_ref[...] = jnp.full_like(acc_ref, neg)

        base = k * tile_n  # global point offset of this block

        def body(s, carry):
            start = s * sub
            if not isinstance(start, int):
                start = pl.multiple_of(start, sub)
            chunk = x_ref[:, pl.ds(start, sub), :].astype(acc_dtype)  # (tb, sub, C_in)
            if mask_tail:
                # Mask points past N (ragged tail of the last block) to -inf so
                # undefined out-of-bounds data never wins the max.
                pt = base + start + lax.broadcasted_iota(jnp.int32, (1, sub, 1), 1)
                chunk = jnp.where(pt < n_points, chunk,
                                  jnp.asarray(neg, dtype=acc_dtype))
            # Fold points onto `fold` sublane rows: running elementwise max is
            # pure VPU work; the single cross-sublane reduce happens in finalize.
            folded = chunk.reshape(tile_b, sub // fold, fold, c_in)
            acc_ref[...] = jnp.maximum(acc_ref[...], jnp.max(folded, axis=1))
            return carry

        if trip == 1:
            body(0, 0)
        else:
            lax.fori_loop(0, trip, body, 0, unroll=(trip <= 8))

        @pl.when(k == pl.num_programs(1) - 1)
        def _():
            # One small sublane reduce, then MXU matmul + bias (lane-dense output).
            pooled = jnp.max(acc_ref[...], axis=1)            # (tb, C_in)
            y = jnp.dot(pooled, w_ref[...], preferred_element_type=jnp.float32)
            o_ref[...] = (y + b_ref[...].astype(jnp.float32)).astype(o_ref.dtype)

    return kernel


def classifier_head(x, w, b, *, target_block_bytes=None):
    """x: [B, N, C_in], w: [C_in, C_out], b: [1, C_out] -> [B, C_out]."""
    B, N, C_in = x.shape
    C_out = w.shape[1]

    if not jnp.issubdtype(x.dtype, jnp.floating):
        x = x.astype(jnp.float32)  # integer point features: promote
    itemsize = jnp.dtype(x.dtype).itemsize

    # dtype-aware sublane fold (8 f32 / 16 bf16 / 32 one-byte types).
    fold = 8 * max(1, 4 // itemsize)
    acc_dtype = x.dtype if x.dtype in (jnp.dtype(jnp.float32), jnp.dtype(jnp.bfloat16)) \
        else jnp.float32

    # Per-generation VMEM capacity (fallback = conservative 64 MiB, safe on v7x).
    try:
        vmem_cap = int(pltpu.get_tpu_info().vmem_capacity_bytes)
    except Exception:
        vmem_cap = 64 * MIB
    ceiling = int(vmem_cap * 0.85)          # ~54 MiB on v7x, ~108 MiB on v5e/v6e

    if target_block_bytes is None:
        target_block_bytes = 4 * MIB if vmem_cap <= 64 * MIB else 8 * MIB

    # Lane-dense output: pad only W/b/output columns. x's channel dim is NOT padded.
    C_out_p = _round_up(C_out, LANE)

    # Batch tiling (parallel grid axis).
    tile_b = B if B <= 8 else 8

    # Point tiling (reduction axis, last): target multi-MiB HBM blocks, clamped
    # by the lane-padded VMEM footprint and by N.
    c_lane = _round_up(C_in, LANE)
    acc_itemsize = jnp.dtype(acc_dtype).itemsize
    w_vmem = _round_up(C_in, 8) * C_out_p * jnp.dtype(w.dtype).itemsize
    b_vmem = 8 * C_out_p * jnp.dtype(b.dtype).itemsize
    out_vmem = _round_up(tile_b, 8) * C_out_p * itemsize
    acc_vmem = _round_up(tile_b, 8) * fold * c_lane * acc_itemsize
    fixed_vmem = 2 * (w_vmem + b_vmem + out_vmem) + acc_vmem

    x_row_hbm = tile_b * C_in * itemsize      # true HBM bytes per point row
    x_row_vmem = tile_b * c_lane * itemsize   # lane-padded VMEM bytes per point row

    n_cap = _round_up(N, fold)
    tile_n = max(fold, target_block_bytes // x_row_hbm)
    budget_x = max(ceiling - fixed_vmem - 4 * MIB, 2 * MIB)
    tile_n = min(tile_n, max(fold, budget_x // (2 * x_row_vmem)))
    tile_n = max(fold, (tile_n // fold) * fold)
    tile_n = min(tile_n, n_cap)
    if tile_n >= 512:
        tile_n = (tile_n // 512) * 512        # 512-point sub-slices inside the block
        sub = 512
    else:
        sub = tile_n

    grid = (pl.cdiv(B, tile_b), pl.cdiv(N, tile_n))
    mask_tail = (N % tile_n) != 0

    # VMEM limit ~= 1.5x actual footprint, capped per generation.
    vmem_needed = 2 * tile_n * x_row_vmem + fixed_vmem
    vmem_limit = int(min(max(int(1.5 * vmem_needed), 16 * MIB), ceiling))

    # Only the tiny tensors get padded host-side.
    w_p = jnp.pad(w, ((0, 0), (0, C_out_p - C_out))) if C_out_p != C_out else w
    b_p = jnp.pad(b, ((0, 0), (0, C_out_p - C_out))) if C_out_p != C_out else b

    kernel = _make_kernel(tile_b=tile_b, tile_n=tile_n, sub=sub, fold=fold,
                          c_in=C_in, n_points=N, acc_dtype=acc_dtype,
                          mask_tail=mask_tail)

    out_p = pl.pallas_call(
        kernel,
        out_shape=jax.ShapeDtypeStruct((B, C_out_p), x.dtype),
        grid_spec=pltpu.PrefetchScalarGridSpec(
            num_scalar_prefetch=0,
            grid=grid,
            in_specs=[
                # x: last dim is the TRUE C_in (full-dim block, no lane padding).
                pl.BlockSpec((tile_b, tile_n, C_in), lambda bi, k: (bi, k, 0)),
                # W / b: constant index maps -> resident across the grid.
                pl.BlockSpec((C_in, C_out_p), lambda bi, k: (0, 0)),
                pl.BlockSpec((1, C_out_p), lambda bi, k: (0, 0)),
            ],
            out_specs=pl.BlockSpec((tile_b, C_out_p), lambda bi, k: (bi, 0)),
            scratch_shapes=[pltpu.VMEM((tile_b, fold, C_in), acc_dtype)],
        ),
        compiler_params=pltpu.CompilerParams(
            dimension_semantics=("parallel", "arbitrary"),
            vmem_limit_bytes=vmem_limit,
        ),
    )(x, w_p, b_p)

    return out_p[:, :C_out]


if __name__ == "__main__":
    # Small shapes consistent with the module (in_channels -> out_channels).
    # N deliberately not a multiple of 8 to exercise the in-kernel tail mask.
    B, N, C_in, C_out = 2, 100, 32, 40

    key = jax.random.PRNGKey(0)
    kx, kw, kb = jax.random.split(key, 3)

    x = jax.random.normal(kx, (B, N, C_in), dtype=jnp.float32)

    # nn.Linear(in, out) parameters, weight stored transposed as [in, out].
    bound = 1.0 / (C_in ** 0.5)
    w = jax.random.uniform(kw, (C_in, C_out), jnp.float32, -bound, bound)
    b = jax.random.uniform(kb, (1, C_out), jnp.float32, -bound, bound)

    out = classifier_head(x, w, b)
    out = jax.block_until_ready(out)

    # Pure-JAX reference check (global max pool over points, then linear).
    ref = jnp.max(x, axis=1) @ w + b
    assert out.shape == (B, C_out)
    assert jnp.allclose(out, ref, atol=1e-5, rtol=1e-5)

    print("KERNEL_OK")
</pallas_src>

<mosaic_0001>
module attributes {stable_mosaic.version = 11 : i64} {
  func.func @kernel(%arg0: i32, %arg1: i32, %arg2: memref<2x104x32xf32, #tpu.memory_space<vmem>>, %arg3: memref<32x128xf32, #tpu.memory_space<vmem>>, %arg4: memref<1x128xf32, #tpu.memory_space<vmem>>, %arg5: memref<2x128xf32, #tpu.memory_space<vmem>>, %arg6: memref<2x8x32xf32, #tpu.memory_space<vmem>>) attributes {dimension_semantics = [#tpu.dimension_semantics<parallel>, #tpu.dimension_semantics<arbitrary>], iteration_bounds = array<i64: 1, 1>, scalar_prefetch = 0 : i64, scratch_operands = 1 : i64, tpu.core_type = #tpu.core_type<tc>, window_params = [{transform_indices = @transform_0, window_bounds = array<i64: 2, 104, 32>}, {pipeline_mode = #tpu.pipeline_mode<synchronous>, transform_indices = @transform_1, window_bounds = array<i64: 32, 128>}, {pipeline_mode = #tpu.pipeline_mode<synchronous>, transform_indices = @transform_2, window_bounds = array<i64: 1, 128>}, {transform_indices = @transform_3, window_bounds = array<i64: 2, 128>}]} {
    %c0_i32 = arith.constant 0 : i32
    %0 = arith.cmpi eq, %arg1, %c0_i32 : i32
    %1 = arith.extui %0 : i1 to i32
    %c0_i32_0 = arith.constant 0 : i32
    %2 = arith.cmpi ne, %1, %c0_i32_0 : i32
    scf.if %2 {
      %cst_13 = arith.constant 0xFF800000 : f32
      %23 = vector.broadcast %cst_13 : f32 to vector<2x8x32xf32>
      %c0_14 = arith.constant 0 : index
      %c0_15 = arith.constant 0 : index
      %c0_16 = arith.constant 0 : index
      %24 = vector.load %arg6[%c0_14, %c0_15, %c0_16] : memref<2x8x32xf32, #tpu.memory_space<vmem>>, vector<2x8x32xf32>
      tpu.vector_store %arg6[%c0_14, %c0_15, %c0_16], %23 {strides = array<i32>} : memref<2x8x32xf32, #tpu.memory_space<vmem>>, vector<2x8x32xf32>,
    } else {
    }
    %c104_i32 = arith.constant 104 : i32
    %3 = arith.muli %arg1, %c104_i32 : i32
    %c0 = arith.constant 0 : index
    %c0_1 = arith.constant 0 : index
    %c0_2 = arith.constant 0 : index
    %4 = vector.load %arg2[%c0, %c0_1, %c0_2] : memref<2x104x32xf32, #tpu.memory_space<vmem>>, vector<2x104x32xf32>
    %c0_i32_3 = arith.constant 0 : i32
    %5 = arith.addi %3, %c0_i32_3 : i32
    %6 = tpu.iota {dimensions = array<i32: 1>} : vector<1x104x1xi32>
    %7 = vector.broadcast %5 : i32 to vector<1x104x1xi32>
    %8 = arith.addi %7, %6 : vector<1x104x1xi32>
    %c100_i32 = arith.constant 100 : i32
    %9 = vector.broadcast %c100_i32 : i32 to vector<1x104x1xi32>
    %10 = arith.cmpi slt, %8, %9 : vector<1x104x1xi32>
    %cst = arith.constant 0xFF800000 : f32
    %11 = vector.shape_cast %10 : vector<1x104x1xi1> to vector<1x104x1xi1>
    %12 = vector.broadcast %11 : vector<1x104x1xi1> to vector<2x104x32xi1>
    %13 = vector.broadcast %cst : f32 to vector<2x104x32xf32>
    %14 = arith.select %12, %4, %13 : vector<2x104x32xi1>, vector<2x104x32xf32>
    %15 = vector.shape_cast %14 : vector<2x104x32xf32> to vector<2x13x8x32xf32>
    %c0_4 = arith.constant 0 : index
    %c0_5 = arith.constant 0 : index
    %c0_6 = arith.constant 0 : index
    %16 = vector.load %arg6[%c0_4, %c0_5, %c0_6] : memref<2x8x32xf32, #tpu.memory_space<vmem>>, vector<2x8x32xf32>
    %cst_7 = arith.constant dense<0xFF800000> : vector<2x8x32xf32>
    %17 = vector.multi_reduction <maximumf>, %15, %cst_7 [1] : vector<2x13x8x32xf32> to vector<2x8x32xf32>
    %18 = arith.maximumf %16, %17 : vector<2x8x32xf32>
    %c0_8 = arith.constant 0 : index
    %c0_9 = arith.constant 0 : index
    %c0_10 = arith.constant 0 : index
    %19 = vector.load %arg6[%c0_8, %c0_9, %c0_10] : memref<2x8x32xf32, #tpu.memory_space<vmem>>, vector<2x8x32xf32>
    tpu.vector_store %arg6[%c0_8, %c0_9, %c0_10], %18 {strides = array<i32>} : memref<2x8x32xf32, #tpu.memory_space<vmem>>, vector<2x8x32xf32>,
    %c0_i32_11 = arith.constant 0 : i32
    %20 = arith.cmpi eq, %arg1, %c0_i32_11 : i32
    %21 = arith.extui %20 : i1 to i32
    %c0_i32_12 = arith.constant 0 : i32
    %22 = arith.cmpi ne, %21, %c0_i32_12 : i32
    scf.if %22 {
      %c0_13 = arith.constant 0 : index
      %c0_14 = arith.constant 0 : index
      %c0_15 = arith.constant 0 : index
      %23 = vector.load %arg6[%c0_13, %c0_14, %c0_15] : memref<2x8x32xf32, #tpu.memory_space<vmem>>, vector<2x8x32xf32>
      %cst_16 = arith.constant dense<0xFF800000> : vector<2x32xf32>
      %24 = vector.multi_reduction <maximumf>, %23, %cst_16 [1] : vector<2x8x32xf32> to vector<2x32xf32>
      %c0_17 = arith.constant 0 : index
      %c0_18 = arith.constant 0 : index
      %25 = vector.load %arg3[%c0_17, %c0_18] : memref<32x128xf32, #tpu.memory_space<vmem>>, vector<32x128xf32>
      %cst_19 = arith.constant dense<0.000000e+00> : vector<2x128xf32>
      %26 = tpu.matmul %24, %25, %cst_19 {dimension_numbers = #tpu.dot_dimension_numbers<[1], [0], [0], [1], [0, 0, 1, 1], [], []>} : vector<2x32xf32>, vector<32x128xf32>, vector<2x128xf32> -> vector<2x128xf32>
      %c0_20 = arith.constant 0 : index
      %c0_21 = arith.constant 0 : index
      %27 = vector.load %arg4[%c0_20, %c0_21] : memref<1x128xf32, #tpu.memory_space<vmem>>, vector<1x128xf32>
      %28 = vector.broadcast %27 : vector<1x128xf32> to vector<2x128xf32>
      %29 = arith.addf %26, %28 : vector<2x128xf32>
      %c0_22 = arith.constant 0 : index
      %c0_23 = arith.constant 0 : index
      %30 = vector.load %arg5[%c0_22, %c0_23] : memref<2x128xf32, #tpu.memory_space<vmem>>, vector<2x128xf32>
      tpu.vector_store %arg5[%c0_22, %c0_23], %29 {strides = array<i32>} : memref<2x128xf32, #tpu.memory_space<vmem>>, vector<2x128xf32>,
    } else {
    }
    return
  }
  func.func @transform_0(%arg0: i32, %arg1: i32) -> (i32, i32, i32) {
    %c0_i32 = arith.constant 0 : i32
    %c0_i32_0 = arith.constant 0 : i32
    return %arg0, %arg1, %c0_i32 : i32, i32, i32
  }
  func.func @transform_1(%arg0: i32, %arg1: i32) -> (i32, i32) {
    %c0_i32 = arith.constant 0 : i32
    %c0_i32_0 = arith.constant 0 : i32
    %c0_i32_1 = arith.constant 0 : i32
    return %c0_i32, %c0_i32_0 : i32, i32
  }
  func.func @transform_2(%arg0: i32, %arg1: i32) -> (i32, i32) {
    %c0_i32 = arith.constant 0 : i32
    %c0_i32_0 = arith.constant 0 : i32
    %c0_i32_1 = arith.constant 0 : i32
    return %c0_i32, %c0_i32_0 : i32, i32
  }
  func.func @transform_3(%arg0: i32, %arg1: i32) -> (i32, i32) {
    %c0_i32 = arith.constant 0 : i32
    %c0_i32_0 = arith.constant 0 : i32
    return %arg0, %c0_i32 : i32, i32
  }
}

</mosaic_0001>

<bundles_post_ra>
// kernel: tpu_custom_call.1
= control target key start
LH: loop header
LB: loop body
LE: loop exit
PB: predicated region body
PF: predicated region fallthrough
CT: control target
= control target key end

     0   :  { %v49_v3 = vlaneseq  ;;  %v373_v4 = vmov 0.0|0.0   ;;  %vm374_vm0 = vmmov 0   ;;  %v375_v7 = vmov 0.0   ;;  %s538_s0 = inlined_call_operand.vmem [shape: f32[2,100,32], index: 0, kind: input, shape index: {}]   ;;  %s539_s1 = inlined_call_operand.vmem [shape: f32[32,128], index: 1, kind: input, shape index: {}]   ;;  %s540_s2 = inlined_call_operand.vmem [shape: f32[1,128], index: 2, kind: input, shape index: {}]   ;;  %s541_s3 = inlined_call_operand.hbm [shape: f32[2,128], index: 3, kind: output, shape index: {}]  }
   0x1   :  { %v218_v0 = vld [vmem:[%s539_s1] sm:$0xff]  ;;  %v219_v1 = vld [vmem:[%s539_s1 + $0x8] sm:$0xff]  ;;  %v220_v2 = vld [vmem:[%s539_s1 + $0x10] sm:$0xff]  ;;  %338 = vmatprep.subr.bf16.mxu0 %v373_v4  ;;  %335 = vmatprep.mubr.msk.f32.mxu0 %vm374_vm0, %v375_v7  ;;  %vm19_vm1 = vcmask 261120   ;;  %v376_v10 = vmov -inf  }
   0x2   :  { %v339_v5 = vpack.c.bf16 %v219_v1, %v218_v0  ;;  %v221_v6 = vld [vmem:[%s539_s1 + $0x18] sm:$0xff]  ;;  %v23_v8 = vld [vmem:[%s538_s0] sm:$0xff]  ;;  %v24_v9 = vld [vmem:[%s538_s0 + $0x8] sm:$0xff]  ;;  %20 = vst.msk [vmem:[#allocation2] sm:$0xff] %vm19_vm1, %v376_v10  ;;  %v50_v14 = vshrl.u32 %v49_v3, 7 }
   0x3   :  { %21 = vst.msk [vmem:[#allocation2 + $0x8] sm:$0xff] %vm19_vm1, %v376_v10  ;;  %v25_v11 = vld [vmem:[%s538_s0 + $0x10] sm:$0xff]  ;;  %v26_v12 = vld [vmem:[%s538_s0 + $0x18] sm:$0xff]  ;;  %v27_v13 = vld [vmem:[%s538_s0 + $0x20] sm:$0xff]  ;;  %v145_v15 = vsel %vm19_vm1, %v23_v8, -inf  ;;  %v146_v16 = vsel %vm19_vm1, %v24_v9, -inf  ;;  %v342_v17 = vpack.c.bf16 %v221_v6, %v220_v2 }
   0x4   :  { %340 = vmatpush3.bf16.msra.mxu0 %v339_v5  ;;  %v28_v18 = vld [vmem:[%s538_s0 + $0x28] sm:$0xff]  ;;  %v29_v19 = vld [vmem:[%s538_s0 + $0x30] sm:$0xff]  ;;  %v30_v20 = vld [vmem:[%s538_s0 + $0x38] sm:$0xff]  ;;  %v147_v21 = vsel %vm19_vm1, %v25_v11, -inf  ;;  %v149_v22 = vsel %vm19_vm1, %v26_v12, -inf  ;;  %v151_v23 = vsel %vm19_vm1, %v27_v13, -inf }
   0x5   :  { %341 = vmatprep.subr.bf16.mxu0 %v373_v4  ;;  %v31_v24 = vld [vmem:[%s538_s0 + $0x40] sm:$0xff]  ;;  %v32_v25 = vld [vmem:[%s538_s0 + $0x48] sm:$0xff]  ;;  %v33_v26 = vld [vmem:[%s538_s0 + $0x50] sm:$0xff]  ;;  %v62_v27 = vadd.s32 96, %v50_v14  ;;  %v148_v28 = vmax.f32 %v145_v15, %v147_v21  ;;  %v150_v29 = vmax.f32 %v146_v16, %v149_v22  ;;  %v153_v30 = vsel %vm19_vm1, %v28_v18, -inf }
   0x6   :  { %v34_v31 = vld [vmem:[%s538_s0 + $0x58] sm:$0xff]  ;;  %v35_v32 = vld [vmem:[%s538_s0 + $0x60] sm:$0xff]  ;;  %v36_v33 = vld [vmem:[%s538_s0 + $0x68] sm:$0xff]  ;;  %v155_v34 = vsel %vm19_vm1, %v29_v19, -inf  ;;  %v157_v35 = vsel %vm19_vm1, %v30_v20, -inf  ;;  %v159_v42 = vsel %vm19_vm1, %v31_v24, -inf }
   0x7   :  { %v37_v36 = vld [vmem:[%s538_s0 + $0x70] sm:$0xff]  ;;  %v38_v37 = vld [vmem:[%s538_s0 + $0x78] sm:$0xff]  ;;  %v39_v38 = vld [vmem:[%s538_s0 + $0x80] sm:$0xff]  ;;  %vm89_vm2 = vcmp.lt.s32.totalorder %v62_v27, 100  ;;  %v152_v39 = vmax.f32 %v148_v28, %v151_v23  ;;  %v154_v40 = vmax.f32 %v150_v29, %v153_v30  ;;  %v161_v43 = vsel %vm19_vm1, %v32_v25, -inf }
   0x8   :  { %343 = vmatpush3.bf16.msra.mxu0 %v342_v17  ;;  %v128_v41 = vsel %vm89_vm2, %v35_v32, -inf  ;;  %v40_v44 = vld [vmem:[%s538_s0 + $0x88] sm:$0xff]  ;;  %v41_v45 = vld [vmem:[%s538_s0 + $0x90] sm:$0xff]  ;;  %v42_v46 = vld [vmem:[%s538_s0 + $0x98] sm:$0xff]  ;;  %v163_v49 = vsel %vm19_vm1, %v33_v26, -inf  ;;  %v170_v50 = vsel %vm19_vm1, %v36_v33, -inf }
   0x9   :  { %v156_v47 = vmax.f32 %v152_v39, %v155_v34  ;;  %v158_v48 = vmax.f32 %v154_v40, %v157_v35  ;;  %v43_v51 = vld [vmem:[%s538_s0 + $0xa0] sm:$0xff]  ;;  %v165_v52 = vsel %vm19_vm1, %v34_v31, -inf  ;;  %v171_v53 = vsel %vm19_vm1, %v37_v36, -inf  ;;  %v44_v56 = vld [vmem:[%s538_s0 + $0xa8] sm:$0xff]  ;;  %v45_v57 = vld [vmem:[%s538_s0 + $0xb0] sm:$0xff] }
   0xa   :  { %v172_v54 = vsel %vm19_vm1, %v38_v37, -inf  ;;  %v174_v55 = vsel %vm19_vm1, %v39_v38, -inf  ;;  %v167_v60 = vsel %vm19_vm1, %v128_v41, -inf  ;;  %v48_v62 = vld [vmem:[%s538_s0 + $0xc8] sm:$0xff]  ;;  %v176_v0 = vsel %vm19_vm1, %v40_v44, -inf }
   0xb   :  { %v160_v58 = vmax.f32 %v156_v47, %v159_v42  ;;  %v162_v59 = vmax.f32 %v158_v48, %v161_v43  ;;  %v173_v61 = vmax.f32 %v170_v50, %v172_v54  ;;  %v175_v63 = vmax.f32 %v171_v53, %v174_v55 }
   0xc   :  { %v178_v1 = vsel %vm19_vm1, %v41_v45, -inf  ;;  %v180_v2 = vsel %vm19_vm1, %v42_v46, -inf }
   0xd   :  { %8 = vsyncpa [#allocation4], 0  ;;  %v46_v3 = vld [vmem:[%s538_s0 + $0xb8] sm:$0xff]  ;;  %v164_v4 = vmax.f32 %v160_v58, %v163_v49  ;;  %v166_v5 = vmax.f32 %v162_v59, %v165_v52  ;;  %v177_v6 = vmax.f32 %v173_v61, %v176_v0  ;;  %v182_v7 = vsel %vm19_vm1, %v43_v51, -inf  ;;  %v47_v8 = vld [vmem:[%s538_s0 + $0xc0] sm:$0xff]  ;;  %s377_s17 = smov [#allocation3]  }
   0xe   :  { %v179_v9 = vmax.f32 %v175_v63, %v178_v1  ;;  %v184_v10 = vsel %vm19_vm1, %v44_v56, -inf  ;;  %v141_v11 = vsel %vm89_vm2, %v48_v62, -inf  ;;  %v186_v14 = vsel %vm19_vm1, %v45_v57, -inf  ;;  %v142_v15 = vld [vmem:[#allocation2] sm:$0xff]  ;;  %v143_v27 = vld [vmem:[#allocation2 + $0x8] sm:$0xff]  ;;  %s312_s18 = sshll.u32 %s377_s17, 4  ;;  %s313_s18 = int_to_ptr.vmem [resolvable:$true] %s312_s18 }
   0xf   :  { %v168_v12 = vmax.f32 %v164_v4, %v167_v60  ;;  %v181_v13 = vmax.f32 %v177_v6, %v180_v2  ;;  %v188_v17 = vsel %vm19_vm1, %v46_v3, -inf  ;;  %v190_v20 = vsel %vm19_vm1, %v47_v8, -inf  ;;  %v320_v47 = vld [vmem:[%s540_s2] ss:$0 sm:$0xff]  ;;  %s349_s19 = scalar_lea.vmem %s313_s18, 32  ;;  %p354_p1 = scmp.lt.s32.totalorder %s313_s18, %s313_s18 }
  0x10   :  { %v183_v16 = vmax.f32 %v179_v9, %v182_v7  ;;  %v192_v22 = vsel %vm19_vm1, %v141_v11, -inf  ;;  %vm231_vm3 = vcmask 1041409   ;;  %p350_p0 = scmp.ne.s32.totalorder %s313_s18, %s349_s19  ;;  %p355_p2 = scmp.lt.s32.totalorder %s349_s19, %s349_s19 }
  0x11   :  { %v169_v18 = vmax.f32 %v168_v12, %v166_v5  ;;  %v185_v19 = vmax.f32 %v181_v13, %v184_v10 }
  0x12   :  { %v187_v21 = vmax.f32 %v183_v16, %v186_v14  ;;  %p356_p3 = por %p355_p2, %p354_p1 }
  0x13   :  { %v189_v23 = vmax.f32 %v185_v19, %v188_v17  ;;  %v195_v24 = vmax.f32 %v142_v15, %v169_v18 }
  0x14   :  { %v191_v25 = vmax.f32 %v187_v21, %v190_v20  ;;  %p357_p4 = pnand %p356_p3, %p350_p0 }
  0x15   :  { %v193_v26 = vmax.f32 %v189_v23, %v192_v22  ;;  %197 = vst.msk [vmem:[#allocation2] sm:$0xff] %vm19_vm1, %v195_v24 }
  0x17   :  { %v194_v28 = vmax.f32 %v193_v26, %v191_v25 }
  0x19   :  { %v196_v29 = vmax.f32 %v143_v27, %v194_v28 }
  0x1b   :  { %198 = vst.msk [vmem:[#allocation2 + $0x8] sm:$0xff] %vm19_vm1, %v196_v29 }
  0x1c   :  { %v202_v30 = vld [vmem:[#allocation2] sm:$0xff] }
  0x1d   :  { %v204_v31 = vsel %vm19_vm1, %v202_v30, -inf }
  0x1e   :  { %v205_v32 = vrot.slane %v204_v31, 4 }
  0x20   :  { %v206_v33 = vmax.f32 %v204_v31, %v205_v32 }
  0x22   :  { %v203_v34 = vld [vmem:[#allocation2 + $0x8] sm:$0xff]  ;;  %v207_v35 = vrot.slane %v206_v33, 2 }
  0x23   :  { %v211_v36 = vsel %vm19_vm1, %v203_v34, -inf }
  0x24   :  { %v208_v37 = vmax.f32 %v206_v33, %v207_v35  ;;  %v212_v38 = vrot.slane %v211_v36, 4 }
  0x26   :  { %v213_v39 = vmax.f32 %v211_v36, %v212_v38  ;;  %v209_v40 = vrot.slane %v208_v37, 1 }
  0x28   :  { %v214_v41 = vrot.slane %v213_v39, 2  ;;  %v210_v43 = vmax.f32 %v208_v37, %v209_v40 }
  0x2a   :  { %v215_v42 = vmax.f32 %v213_v39, %v214_v41 }
  0x2c   :  { %v216_v44 = vrot.slane %v215_v42, 1 }
  0x2e   :  { %v217_v45 = vmax.f32 %v215_v42, %v216_v44 }
  0x30   :  { %v232_v46 = vsel %vm231_vm3, %v217_v45, %v210_v43 }
  0x31   :  { %336 = vmatmul.mubr.msk.f32.vlgmr.msra.gmra.mrb[0].mxu0 %vm19_vm1, %v232_v46 }
 0x104   :  { %v301_v48 = vpop.f32.mrb[0].mxu0 }
 0x105   :  { %v302_v49 = vadd.f32 %v320_v47, %v301_v48  ;;  %v337_v50 = vpop.f32.mrb[1].mxu0 }
 0x107   :  { %305 = vst [vmem:[#allocation3] sm:$0x3] %v302_v49 }
 0x108   :  { %360 = shalt.err (!%p357_p4)
}
 0x109   :  { %s361_s22 = scalar_lea.hbm %s541_s3, 32 }
 0x10a   :  { %p362_p5 = scmp.ne.s32.totalorder %s541_s3, %s361_s22  ;;  %p365_p6 = scmp.lt.u32.totalorder %s361_s22, %s541_s3 }
 0x10c   :  { %p367_p7 = pnand %p365_p6, %p362_p5 }
 0x10e   :  { %370 = shalt.err (!%p367_p7)
}
 0x10f   :  { %315 = dma.vmem_to_hbm [thread:$0]  %s313_s18, 32, %s541_s3, [#allocation4]  }
 0x110   :  { %371 = dma.done.wait [#allocation4], 32  }
 0x111   :  { %372 = vsyncadd [#allocation4], 4294967264 }
 0x112   :  { %319 = vsyncpa [#allocation4], 1 }

</bundles_post_ra>
